<compile_context>
chip_gen: v7x
topology: tpu7x:2x2x1
jax: 0.10.0
libtpu: 0.0.40
codegen_flags: <defaults>
</compile_context>

<pallas_src>
import functools
from typing import Dict

import jax
import jax.numpy as jnp
import numpy as np
from jax import lax
from jax.experimental import pallas as pl
from jax.experimental.pallas import tpu as pltpu


def _fused_kernel(*refs, band_cols_meta, num_bands, eps):
    """One grid step = one batch sample, all bands (band loop unrolled at trace).

    refs = (x_col[0..nb-1], w_flat[0..nb-1], bias, gamma, beta, out)
      x_col[b] : (1, 9*C_in_b, F_b*T)   bf16  im2col (K on sublanes, spatial on lanes)
      w_flat[b]: (C_out, 9*C_in_b)      bf16
      bias/gamma/beta: (num_bands, C_out, 1)  f32
      out      : (1, C_out, F_out*T)    f32   flattened NCHW
    """
    x_refs = refs[:num_bands]
    w_refs = refs[num_bands:2 * num_bands]
    bias_ref, gamma_ref, beta_ref = refs[2 * num_bands:2 * num_bands + 3]
    o_ref = refs[-1]

    for bidx, (col_off, col_len) in enumerate(band_cols_meta):
        x = x_refs[bidx][0]                  # (K, F_b*T)  bf16
        w = w_refs[bidx][...]                # (C_out, K)  bf16

        # 3x3 'same' conv for the whole band as a single MXU matmul.
        conv = jnp.dot(w, x, preferred_element_type=jnp.float32)   # (C_out, F_b*T) f32
        z = conv + bias_ref[bidx]            # + (C_out, 1) bias column

        # GroupNorm(num_groups=1): stats over all of (C, F_b, T) for this sample,
        # two-pass biased variance, all in f32 (v5e has no bf16 VPU/EUP).
        inv_n = 1.0 / float(z.shape[0] * z.shape[1])
        mean = jnp.sum(z) * inv_n
        c = z - mean
        var = jnp.sum(c * c) * inv_n
        a = gamma_ref[bidx] * lax.rsqrt(var + eps)    # (C_out, 1) fused scale
        y = c * a + beta_ref[bidx]                    # one FMA per element

        # Band slab lands directly at its frequency offset inside the
        # flattened-NCHW output block (static slice -> unmasked-ish stores).
        o_ref[0, :, col_off:col_off + col_len] = y.astype(o_ref.dtype)


class SplitBandEmbeddingPallas:
    """JAX/Pallas port of WHYV2 SplitBandEmbedding (synthetic deterministic params)."""

    def __init__(self, emb_dim: int = 32, input_n_freqs: int = 16,
                 audio_channel: int = 1,
                 split_points: Dict[int, int] = None, eps: float = 1e-5,
                 key=None):
        if split_points is None:
            split_points = {8: 1, 16: 2}
        assert input_n_freqs == max(split_points.keys())
        self.emb_dim = emb_dim
        self.audio_channel = audio_channel
        self.split_points = dict(split_points)
        self.eps = float(eps)

        if key is None:
            key = jax.random.PRNGKey(0)

        self.bands = []     # static metadata per band
        self.w_conv = []    # (3, 3, C_in, C_out) bf16  (reference orientation)
        self.w_flat = []    # (C_out, 9*C_in)     bf16  (kernel, pre-flattened)
        biases, gammas, betas = [], [], []
        self.output_n_freqs = 0
        prev = 0
        for sp in sorted(split_points.keys()):
            n = self.split_points[sp]
            assert (sp - prev) % n == 0
            F_b = (sp - prev) // n
            c_in = 2 * audio_channel * n
            kw_, kb_, kg_, kbe_, key = jax.random.split(key, 5)
            w = (0.1 * jax.random.normal(kw_, (3, 3, c_in, emb_dim), jnp.float32)
                 ).astype(jnp.bfloat16)
            self.w_conv.append(w)
            # Flatten to (C_out, 9*C_in) with k = (kh*3 + kw)*C_in + c -- matches
            # the im2col slab order built in _forward_impl.
            self.w_flat.append(
                jnp.transpose(w, (3, 0, 1, 2)).reshape(emb_dim, 9 * c_in))
            biases.append(0.1 * jax.random.normal(kb_, (emb_dim,), jnp.float32))
            gammas.append(1.0 + 0.05 * jax.random.normal(kg_, (emb_dim,), jnp.float32))
            betas.append(0.05 * jax.random.normal(kbe_, (emb_dim,), jnp.float32))
            self.bands.append(dict(start=prev, end=sp, N=n, F=F_b, C_in=c_in,
                                   f_off=self.output_n_freqs))
            self.output_n_freqs += F_b
            prev = sp

        self.num_bands = len(self.bands)
        # Per-channel params stored as (num_bands, C_out, 1) columns so the
        # kernel broadcasts them against (C_out, F_b*T) tiles with no relayout.
        self.bias_all = jnp.stack(biases)[:, :, None]     # (nb, C_out, 1) f32
        self.gamma_all = jnp.stack(gammas)[:, :, None]    # (nb, C_out, 1) f32
        self.beta_all = jnp.stack(betas)[:, :, None]      # (nb, C_out, 1) f32

        self._forward = jax.jit(self._forward_impl)

    # ------------------------------------------------------------------ #

    def _forward_impl(self, x):
        """x: (B, 2*audio_channel, input_n_freqs, T) f32 -> (B, emb_dim, F_out, T)."""
        B, D, _, T = x.shape
        C_out = self.emb_dim
        F_out = self.output_n_freqs

        # Per band: slice + 'B D (N F) T -> B (D N) F T' (free reshape), zero
        # 3x3 halo, im2col (9 shifted slabs concatenated along channels), then
        # flatten spatial dims -> (B, 9*C_in, F_b*T), bf16 for the MXU.
        band_cols = []
        for band in self.bands:
            F_b, C_in = band["F"], band["C_in"]
            xb = x[:, :, band["start"]:band["end"], :]           # (B, D, N*F, T)
            xb = xb.reshape(B, C_in, F_b, T)                     # (B, D*N, F, T)
            xp = jnp.pad(xb, ((0, 0), (0, 0), (1, 1), (1, 1)))   # 'same' halo
            slabs = [xp[:, :, kh:kh + F_b, kw:kw + T]
                     for kh in range(3) for kw in range(3)]
            xcol = jnp.concatenate(slabs, axis=1)                # (B, 9*C_in, F, T)
            band_cols.append(
                xcol.reshape(B, 9 * C_in, F_b * T).astype(jnp.bfloat16))

        # Static column offsets of each band inside the flattened NCHW output.
        band_cols_meta = tuple((band["f_off"] * T, band["F"] * T)
                               for band in self.bands)

        in_specs = []
        for band in self.bands:
            in_specs.append(pl.BlockSpec((1, 9 * band["C_in"], band["F"] * T),
                                         lambda b: (b, 0, 0)))
        for band in self.bands:
            in_specs.append(pl.BlockSpec((C_out, 9 * band["C_in"]),
                                         lambda b: (0, 0)))
        in_specs += [pl.BlockSpec((self.num_bands, C_out, 1),
                                  lambda b: (0, 0, 0))] * 3

        out_flat = pl.pallas_call(
            functools.partial(_fused_kernel, band_cols_meta=band_cols_meta,
                              num_bands=self.num_bands, eps=self.eps),
            out_shape=jax.ShapeDtypeStruct((B, C_out, F_out * T), jnp.float32),
            grid=(B,),
            in_specs=in_specs,
            out_specs=pl.BlockSpec((1, C_out, F_out * T), lambda b: (b, 0, 0)),
            compiler_params=pltpu.CompilerParams(
                dimension_semantics=("parallel",)),
        )(*band_cols, *self.w_flat, self.bias_all, self.gamma_all, self.beta_all)

        # Free metadata reshape back to NCHW (B, C_out, F_out, T); the kernel
        # already wrote the frequency-concatenated result in that layout.
        return out_flat.reshape(B, C_out, F_out, T)

    def __call__(self, x):
        assert x.shape[1] == 2 * self.audio_channel
        return self._forward(x)

    # ------------------------------------------------------------------ #

    def reference(self, x):
        """Pure-JAX (non-Pallas) reference using lax.conv with the same bf16 operands."""
        B, D, _, T = x.shape
        outs = []
        for bidx, band in enumerate(self.bands):
            xb = x[:, :, band["start"]:band["end"], :]
            xb = xb.reshape(B, band["C_in"], band["F"], T).astype(jnp.bfloat16)
            wt = jnp.transpose(self.w_conv[bidx], (3, 2, 0, 1))   # OIHW, bf16
            y = lax.conv_general_dilated(
                xb, wt, window_strides=(1, 1), padding="SAME",
                dimension_numbers=("NCHW", "OIHW", "NCHW"),
                preferred_element_type=jnp.float32)
            y = y + self.bias_all[bidx, :, 0][None, :, None, None]
            mean = jnp.mean(y, axis=(1, 2, 3), keepdims=True)
            var = jnp.mean(jnp.square(y - mean), axis=(1, 2, 3), keepdims=True)
            y = (y - mean) * lax.rsqrt(var + self.eps)
            y = y * self.gamma_all[bidx, :, 0][None, :, None, None] \
                + self.beta_all[bidx, :, 0][None, :, None, None]
            outs.append(y)
        return jnp.concatenate(outs, axis=-2)


if __name__ == "__main__":
    B, audio_channel, T = 2, 1, 8
    emb_dim = 32
    input_n_freqs = 16
    split_points = {8: 1, 16: 2}   # band (0,8): width 1; band (8,16): width 2

    key = jax.random.PRNGKey(0)
    kx, kp = jax.random.split(key)
    D = 2 * audio_channel
    x = jax.random.normal(kx, (B, D, input_n_freqs, T), dtype=jnp.float32)

    model = SplitBandEmbeddingPallas(
        emb_dim=emb_dim, input_n_freqs=input_n_freqs,
        audio_channel=audio_channel, split_points=split_points,
        eps=1e-5, key=kp)

    y = jax.block_until_ready(model(x))
    assert y.shape == (B, emb_dim, model.output_n_freqs, T), y.shape  # (2, 32, 12, 8)

    y_ref = jax.block_until_ready(model.reference(x))
    np.testing.assert_allclose(np.asarray(y), np.asarray(y_ref),
                               rtol=1e-3, atol=1e-3)
    print("KERNEL_OK")
</pallas_src>

<mosaic_0001>
module attributes {stable_mosaic.version = 11 : i64} {
  func.func @_fused_kernel(%arg0: i32, %arg1: memref<1x18x64xbf16, #tpu.memory_space<vmem>>, %arg2: memref<1x36x32xbf16, #tpu.memory_space<vmem>>, %arg3: memref<32x18xbf16, #tpu.memory_space<vmem>>, %arg4: memref<32x36xbf16, #tpu.memory_space<vmem>>, %arg5: memref<2x32x1xf32, #tpu.memory_space<vmem>>, %arg6: memref<2x32x1xf32, #tpu.memory_space<vmem>>, %arg7: memref<2x32x1xf32, #tpu.memory_space<vmem>>, %arg8: memref<1x32x96xf32, #tpu.memory_space<vmem>>) attributes {dimension_semantics = [#tpu.dimension_semantics<parallel>], iteration_bounds = array<i64: 2>, scalar_prefetch = 0 : i64, scratch_operands = 0 : i64, tpu.core_type = #tpu.core_type<tc>, window_params = [{transform_indices = @transform_0, window_bounds = array<i64: 1, 18, 64>}, {transform_indices = @transform_1, window_bounds = array<i64: 1, 36, 32>}, {pipeline_mode = #tpu.pipeline_mode<synchronous>, transform_indices = @transform_2, window_bounds = array<i64: 32, 18>}, {pipeline_mode = #tpu.pipeline_mode<synchronous>, transform_indices = @transform_3, window_bounds = array<i64: 32, 36>}, {pipeline_mode = #tpu.pipeline_mode<synchronous>, transform_indices = @transform_4, window_bounds = array<i64: 2, 32, 1>}, {pipeline_mode = #tpu.pipeline_mode<synchronous>, transform_indices = @transform_5, window_bounds = array<i64: 2, 32, 1>}, {pipeline_mode = #tpu.pipeline_mode<synchronous>, transform_indices = @transform_6, window_bounds = array<i64: 2, 32, 1>}, {transform_indices = @transform_7, window_bounds = array<i64: 1, 32, 96>}]} {
    %c0 = arith.constant 0 : index
    %c0_0 = arith.constant 0 : index
    %c0_1 = arith.constant 0 : index
    %0 = vector.load %arg1[%c0, %c0_0, %c0_1] : memref<1x18x64xbf16, #tpu.memory_space<vmem>>, vector<1x18x64xbf16>
    %1 = vector.shape_cast %0 : vector<1x18x64xbf16> to vector<18x64xbf16>
    %c0_2 = arith.constant 0 : index
    %c0_3 = arith.constant 0 : index
    %2 = vector.load %arg3[%c0_2, %c0_3] : memref<32x18xbf16, #tpu.memory_space<vmem>>, vector<32x18xbf16>
    %cst = arith.constant dense<0.000000e+00> : vector<32x64xf32>
    %3 = tpu.matmul %2, %1, %cst {dimension_numbers = #tpu.dot_dimension_numbers<[1], [0], [0], [1], [0, 0, 1, 1], [], []>} : vector<32x18xbf16>, vector<18x64xbf16>, vector<32x64xf32> -> vector<32x64xf32>
    %c0_4 = arith.constant 0 : index
    %c0_5 = arith.constant 0 : index
    %c0_6 = arith.constant 0 : index
    %4 = vector.load %arg5[%c0_4, %c0_5, %c0_6] : memref<2x32x1xf32, #tpu.memory_space<vmem>>, vector<1x32x1xf32>
    %5 = vector.shape_cast %4 : vector<1x32x1xf32> to vector<32x1xf32>
    %6 = vector.broadcast %5 : vector<32x1xf32> to vector<32x64xf32>
    %7 = arith.addf %3, %6 : vector<32x64xf32>
    %8 = vector.shape_cast %7 : vector<32x64xf32> to vector<1x32x64xf32>
    %cst_7 = arith.constant dense<0.000000e+00> : vector<1xf32>
    %9 = vector.multi_reduction <add>, %8, %cst_7 [1, 2] : vector<1x32x64xf32> to vector<1xf32>
    %10 = vector.shape_cast %9 : vector<1xf32> to vector<1x1x1xf32>
    %11 = vector.extract %10[0, 0, 0] : f32 from vector<1x1x1xf32>
    %cst_8 = arith.constant 4.8828125E-4 : f32
    %12 = arith.mulf %11, %cst_8 : f32
    %13 = vector.broadcast %12 : f32 to vector<32x64xf32>
    %14 = arith.subf %7, %13 : vector<32x64xf32>
    %15 = arith.mulf %14, %14 : vector<32x64xf32>
    %16 = vector.shape_cast %15 : vector<32x64xf32> to vector<1x32x64xf32>
    %cst_9 = arith.constant dense<0.000000e+00> : vector<1xf32>
    %17 = vector.multi_reduction <add>, %16, %cst_9 [1, 2] : vector<1x32x64xf32> to vector<1xf32>
    %18 = vector.shape_cast %17 : vector<1xf32> to vector<1x1x1xf32>
    %19 = vector.extract %18[0, 0, 0] : f32 from vector<1x1x1xf32>
    %cst_10 = arith.constant 4.8828125E-4 : f32
    %20 = arith.mulf %19, %cst_10 : f32
    %c0_11 = arith.constant 0 : index
    %c0_12 = arith.constant 0 : index
    %c0_13 = arith.constant 0 : index
    %21 = vector.load %arg6[%c0_11, %c0_12, %c0_13] : memref<2x32x1xf32, #tpu.memory_space<vmem>>, vector<1x32x1xf32>
    %22 = vector.shape_cast %21 : vector<1x32x1xf32> to vector<32x1xf32>
    %cst_14 = arith.constant 9.99999974E-6 : f32
    %23 = arith.addf %20, %cst_14 : f32
    %24 = math.rsqrt %23 : f32
    %25 = vector.broadcast %24 : f32 to vector<32x1xf32>
    %26 = arith.mulf %22, %25 : vector<32x1xf32>
    %27 = vector.broadcast %26 : vector<32x1xf32> to vector<32x64xf32>
    %28 = arith.mulf %14, %27 : vector<32x64xf32>
    %c0_15 = arith.constant 0 : index
    %c0_16 = arith.constant 0 : index
    %c0_17 = arith.constant 0 : index
    %29 = vector.load %arg7[%c0_15, %c0_16, %c0_17] : memref<2x32x1xf32, #tpu.memory_space<vmem>>, vector<1x32x1xf32>
    %30 = vector.shape_cast %29 : vector<1x32x1xf32> to vector<32x1xf32>
    %31 = vector.broadcast %30 : vector<32x1xf32> to vector<32x64xf32>
    %32 = arith.addf %28, %31 : vector<32x64xf32>
    %c0_18 = arith.constant 0 : index
    %c0_19 = arith.constant 0 : index
    %c0_20 = arith.constant 0 : index
    %33 = vector.load %arg8[%c0_18, %c0_19, %c0_20] : memref<1x32x96xf32, #tpu.memory_space<vmem>>, vector<1x32x64xf32>
    %34 = vector.shape_cast %33 : vector<1x32x64xf32> to vector<32x64xf32>
    %35 = vector.shape_cast %32 : vector<32x64xf32> to vector<1x32x64xf32>
    tpu.vector_store %arg8[%c0_18, %c0_19, %c0_20], %35 {strides = array<i32>} : memref<1x32x96xf32, #tpu.memory_space<vmem>>, vector<1x32x64xf32>,
    %c0_21 = arith.constant 0 : index
    %c0_22 = arith.constant 0 : index
    %c0_23 = arith.constant 0 : index
    %36 = vector.load %arg2[%c0_21, %c0_22, %c0_23] : memref<1x36x32xbf16, #tpu.memory_space<vmem>>, vector<1x36x32xbf16>
    %37 = vector.shape_cast %36 : vector<1x36x32xbf16> to vector<36x32xbf16>
    %c0_24 = arith.constant 0 : index
    %c0_25 = arith.constant 0 : index
    %38 = vector.load %arg4[%c0_24, %c0_25] : memref<32x36xbf16, #tpu.memory_space<vmem>>, vector<32x36xbf16>
    %cst_26 = arith.constant dense<0.000000e+00> : vector<32x32xf32>
    %39 = tpu.matmul %38, %37, %cst_26 {dimension_numbers = #tpu.dot_dimension_numbers<[1], [0], [0], [1], [0, 0, 1, 1], [], []>} : vector<32x36xbf16>, vector<36x32xbf16>, vector<32x32xf32> -> vector<32x32xf32>
    %c1 = arith.constant 1 : index
    %c0_27 = arith.constant 0 : index
    %c0_28 = arith.constant 0 : index
    %40 = vector.load %arg5[%c1, %c0_27, %c0_28] : memref<2x32x1xf32, #tpu.memory_space<vmem>>, vector<1x32x1xf32>
    %41 = vector.shape_cast %40 : vector<1x32x1xf32> to vector<32x1xf32>
    %42 = vector.broadcast %41 : vector<32x1xf32> to vector<32x32xf32>
    %43 = arith.addf %39, %42 : vector<32x32xf32>
    %44 = vector.shape_cast %43 : vector<32x32xf32> to vector<1x32x32xf32>
    %cst_29 = arith.constant dense<0.000000e+00> : vector<1xf32>
    %45 = vector.multi_reduction <add>, %44, %cst_29 [1, 2] : vector<1x32x32xf32> to vector<1xf32>
    %46 = vector.shape_cast %45 : vector<1xf32> to vector<1x1x1xf32>
    %47 = vector.extract %46[0, 0, 0] : f32 from vector<1x1x1xf32>
    %cst_30 = arith.constant 9.765625E-4 : f32
    %48 = arith.mulf %47, %cst_30 : f32
    %49 = vector.broadcast %48 : f32 to vector<32x32xf32>
    %50 = arith.subf %43, %49 : vector<32x32xf32>
    %51 = arith.mulf %50, %50 : vector<32x32xf32>
    %52 = vector.shape_cast %51 : vector<32x32xf32> to vector<1x32x32xf32>
    %cst_31 = arith.constant dense<0.000000e+00> : vector<1xf32>
    %53 = vector.multi_reduction <add>, %52, %cst_31 [1, 2] : vector<1x32x32xf32> to vector<1xf32>
    %54 = vector.shape_cast %53 : vector<1xf32> to vector<1x1x1xf32>
    %55 = vector.extract %54[0, 0, 0] : f32 from vector<1x1x1xf32>
    %cst_32 = arith.constant 9.765625E-4 : f32
    %56 = arith.mulf %55, %cst_32 : f32
    %c1_33 = arith.constant 1 : index
    %c0_34 = arith.constant 0 : index
    %c0_35 = arith.constant 0 : index
    %57 = vector.load %arg6[%c1_33, %c0_34, %c0_35] : memref<2x32x1xf32, #tpu.memory_space<vmem>>, vector<1x32x1xf32>
    %58 = vector.shape_cast %57 : vector<1x32x1xf32> to vector<32x1xf32>
    %cst_36 = arith.constant 9.99999974E-6 : f32
    %59 = arith.addf %56, %cst_36 : f32
    %60 = math.rsqrt %59 : f32
    %61 = vector.broadcast %60 : f32 to vector<32x1xf32>
    %62 = arith.mulf %58, %61 : vector<32x1xf32>
    %63 = vector.broadcast %62 : vector<32x1xf32> to vector<32x32xf32>
    %64 = arith.mulf %50, %63 : vector<32x32xf32>
    %c1_37 = arith.constant 1 : index
    %c0_38 = arith.constant 0 : index
    %c0_39 = arith.constant 0 : index
    %65 = vector.load %arg7[%c1_37, %c0_38, %c0_39] : memref<2x32x1xf32, #tpu.memory_space<vmem>>, vector<1x32x1xf32>
    %66 = vector.shape_cast %65 : vector<1x32x1xf32> to vector<32x1xf32>
    %67 = vector.broadcast %66 : vector<32x1xf32> to vector<32x32xf32>
    %68 = arith.addf %64, %67 : vector<32x32xf32>
    %c0_40 = arith.constant 0 : index
    %c0_41 = arith.constant 0 : index
    %c64 = arith.constant 64 : index
    %69 = vector.load %arg8[%c0_40, %c0_41, %c64] : memref<1x32x96xf32, #tpu.memory_space<vmem>>, vector<1x32x32xf32>
    %70 = vector.shape_cast %69 : vector<1x32x32xf32> to vector<32x32xf32>
    %71 = vector.shape_cast %68 : vector<32x32xf32> to vector<1x32x32xf32>
    tpu.vector_store %arg8[%c0_40, %c0_41, %c64], %71 {strides = array<i32>} : memref<1x32x96xf32, #tpu.memory_space<vmem>>, vector<1x32x32xf32>,
    return
  }
  func.func @transform_0(%arg0: i32) -> (i32, i32, i32) {
    %c0_i32 = arith.constant 0 : i32
    %c0_i32_0 = arith.constant 0 : i32
    %c0_i32_1 = arith.constant 0 : i32
    return %arg0, %c0_i32, %c0_i32_0 : i32, i32, i32
  }
  func.func @transform_1(%arg0: i32) -> (i32, i32, i32) {
    %c0_i32 = arith.constant 0 : i32
    %c0_i32_0 = arith.constant 0 : i32
    %c0_i32_1 = arith.constant 0 : i32
    return %arg0, %c0_i32, %c0_i32_0 : i32, i32, i32
  }
  func.func @transform_2(%arg0: i32) -> (i32, i32) {
    %c0_i32 = arith.constant 0 : i32
    %c0_i32_0 = arith.constant 0 : i32
    %c0_i32_1 = arith.constant 0 : i32
    return %c0_i32, %c0_i32_0 : i32, i32
  }
  func.func @transform_3(%arg0: i32) -> (i32, i32) {
    %c0_i32 = arith.constant 0 : i32
    %c0_i32_0 = arith.constant 0 : i32
    %c0_i32_1 = arith.constant 0 : i32
    return %c0_i32, %c0_i32_0 : i32, i32
  }
  func.func @transform_4(%arg0: i32) -> (i32, i32, i32) {
    %c0_i32 = arith.constant 0 : i32
    %c0_i32_0 = arith.constant 0 : i32
    %c0_i32_1 = arith.constant 0 : i32
    %c0_i32_2 = arith.constant 0 : i32
    return %c0_i32, %c0_i32_0, %c0_i32_1 : i32, i32, i32
  }
  func.func @transform_5(%arg0: i32) -> (i32, i32, i32) {
    %c0_i32 = arith.constant 0 : i32
    %c0_i32_0 = arith.constant 0 : i32
    %c0_i32_1 = arith.constant 0 : i32
    %c0_i32_2 = arith.constant 0 : i32
    return %c0_i32, %c0_i32_0, %c0_i32_1 : i32, i32, i32
  }
  func.func @transform_6(%arg0: i32) -> (i32, i32, i32) {
    %c0_i32 = arith.constant 0 : i32
    %c0_i32_0 = arith.constant 0 : i32
    %c0_i32_1 = arith.constant 0 : i32
    %c0_i32_2 = arith.constant 0 : i32
    return %c0_i32, %c0_i32_0, %c0_i32_1 : i32, i32, i32
  }
  func.func @transform_7(%arg0: i32) -> (i32, i32, i32) {
    %c0_i32 = arith.constant 0 : i32
    %c0_i32_0 = arith.constant 0 : i32
    %c0_i32_1 = arith.constant 0 : i32
    return %arg0, %c0_i32, %c0_i32_0 : i32, i32, i32
  }
}

</mosaic_0001>

<bundles_post_ra>
// kernel: _forward_impl.1
= control target key start
LH: loop header
LB: loop body
LE: loop exit
PB: predicated region body
PF: predicated region fallthrough
CT: control target
= control target key end

     0   :  { %s996_s24 = smov 0   ;;  %s1188_s0 = inlined_call_operand.vmem [shape: bf16[2,18,64], index: 0, kind: input, shape index: {}]   ;;  %s1189_s1 = inlined_call_operand.vmem [shape: bf16[2,36,32], index: 1, kind: input, shape index: {}]   ;;  %s1190_s2 = inlined_call_operand.vmem [shape: bf16[32,18], index: 2, kind: input, shape index: {}]   ;;  %s1191_s3 = inlined_call_operand.vmem [shape: bf16[32,36], index: 3, kind: input, shape index: {}]   ;;  %s1192_s4 = inlined_call_operand.vmem [shape: f32[2,32,1], index: 4, kind: input, shape index: {}]   ;;  %s1193_s5 = inlined_call_operand.vmem [shape: f32[2,32,1], index: 5, kind: input, shape index: {}]   ;;  %s1194_s6 = inlined_call_operand.vmem [shape: f32[2,32,1], index: 6, kind: input, shape index: {}]   ;;  %s1195_s7 = inlined_call_operand.vmem [shape: f32[2,32,96], index: 7, kind: output, shape index: {}]  }
   0x1 LB: > { %s841_s25 = sadd.s32 4294967295, %s952_s24   ;;  %p845_p0 = scmp.ge.s32.totalorder %s952_s24, 1  ;;  %s952_s24 = sphi %s996_s24, %s17_s24  }
   0x2   : > { %p247_p1 = scmp.lt.s32.totalorder %s952_s24, 3 }
   0x4   : > { %p248_p2 = pnand %p845_p0, %p247_p1 }
   0x5   : > { %p284_p3 = scmp.lt.s32.totalorder (!%p248_p2), %s841_s25, 1  ;;  %v937_v0 = vld [vmem:[%s1190_s2] sm:$0xff] (!%p248_p2)   ;;  %vm350_vm0 = vcmask (!%p248_p2), 146432   ;;  %vm582_vm1 = vcmask (!%p248_p2), 293888   ;;  %v309_v2 = vld [vmem:[%s1192_s4 + $0x10] sm:$0xff] (!%p248_p2)  ;;  %v954_v3 = vmov (!%p248_p2), 0  }
   0x6   : > { %251 = sbr.rel (%p248_p2) target bundleno = 1284 (0x504), region = 48  ;;  %v940_v1 = vld [vmem:[%s1191_s3] sm:$0xff] (!%p248_p2)   ;;  %891 = vmatprep.mubr.msk.bf16.mxu0 (!%p248_p2), %vm350_vm0, %v937_v0  ;;  %932 = vset.pattern.permute.xlu1 (!%p248_p2), %v954_v3  ;;  %v310_v4 = vld [vmem:[%s1192_s4 + $0x18] sm:$0xff] (!%p248_p2)  ;;  %v308_v8 = vld [vmem:[%s1192_s4 + $0x8] sm:$0xff] (!%p248_p2)  ;;  %vm357_vm2 = vcmask (!%p248_p2), 1040384   ;;  %vm589_vm3 = vcmask (!%p248_p2), 1041408  }
   0x7   : > { %901 = vmatprep.mubr.msk.bf16.mxu1 (!%p248_p2), %vm582_vm1, %v940_v1  ;;  %931 = vset.pattern.permute.xlu0 (!%p248_p2), %v954_v3  ;;  %v307_v5 = vld [vmem:[%s1192_s4] sm:$0xff] (!%p248_p2)  ;;  %v938_v14 = vld [vmem:[%s1190_s2 + $0x8] sm:$0xff] (!%p248_p2)   ;;  %v858_v18 = vld [vmem:[%s1192_s4 + $0x30] sm:$0xff] (!%p248_p2)  ;;  %vm410_vm4 = vcmask (!%p248_p2), 523264   ;;  %vm642_vm5 = vcmask (!%p248_p2), 261120   ;;  %s955_s16 = smov (!%p248_p2), 64  }
   0x8   : > { %323 = vperm.xlu1 (!%p248_p2), %932, %v309_v2   ;;  %313 = vperm.xlu0 (!%p248_p2), %931, %v307_v5   ;;  %v856_v11 = vld [vmem:[%s1192_s4 + $0x20] sm:$0xff] (!%p248_p2)  ;;  %v857_v15 = vld [vmem:[%s1192_s4 + $0x28] sm:$0xff] (!%p248_p2)  ;;  %v859_v19 = vld [vmem:[%s1192_s4 + $0x38] sm:$0xff] (!%p248_p2)  ;;  %vm769_vm6 = vcmask (!%p248_p2), 785920  }
   0x9   : > { %v941_v17 = vld [vmem:[%s1191_s3 + $0x8] sm:$0xff] (!%p248_p2)  }
   0xc   : > { %328 = vperm.xlu1 (!%p248_p2), %932, %v310_v4   ;;  %318 = vperm.xlu0 (!%p248_p2), %931, %v308_v8  }
   0xd   : > { %s1197_s25 = smov (!%p284_p3, %s841_s25), 1 }
   0xe   : > { %s907_s30 = smul.u32 12, %s1197_s25  ;;  %s877_s17 = sshll.u32 %s1197_s25, 5 }
   0xf   : > { %s908_s10 = smul.u32 20, %s1197_s25 }
  0x10   : > { %s288_s13 = scalar_lea.vmem %s1188_s0, %s907_s30  ;;  %539 = vperm.xlu1 %932, %v856_v11  }
  0x11   : > { %s293_s20 = scalar_lea.vmem %s1189_s1, %s908_s10  ;;  %v933_v6 = vld [vmem:[%s288_s13] sm:$0xff]   ;;  %v934_v7 = vld [vmem:[%s288_s13 + $0x8] ss:$0 sps:$4 sm:$0x11]  }
  0x12   : > { %v935_v9 = vld [vmem:[%s293_s20] sm:$0xff]   ;;  %887 = vmatprep.subr.bf16.mxu0 %v933_v6  ;;  %v936_v10 = vld [vmem:[%s293_s20 + $0x8] sm:$0xff]   ;;  %v359_v12 = vsel %vm357_vm2, %v934_v7, 0  ;;  %v939_v13 = vld [vmem:[%s293_s20 + $0x10] ss:$0 sps:$4 sm:$0x33]  }
  0x13   : > { %895 = vmatprep.subr.bf16.mxu1 %v935_v9  ;;  %888 = vmatpush3.bf16.msra.mxu0 %v933_v6  ;;  %v591_v16 = vsel %vm589_vm3, %v939_v13, 0 }
  0x14   : > { %896 = vmatpush3.bf16.msra.mxu1 %v935_v9  ;;  %905 = vmatprep.subr.msk.bf16.mxu0 %vm357_vm2, %v934_v7 }
  0x15   : > { %897 = vmatprep.subr.bf16.mxu1 %v936_v10  ;;  %544 = vperm.xlu1 %932, %v857_v15  }
  0x17   : > { %890 = vmatpush3.bf16.msra.mxu0 %v359_v12 }
  0x18   : > { %898 = vmatpush3.bf16.msra.mxu1 %v936_v10 }
  0x19   : > { %906 = vmatprep.subr.msk.bf16.mxu1 %vm589_vm3, %v939_v13  ;;  %549 = vperm.xlu1 %932, %v858_v18  }
  0x1a   : > { %892 = vmatmul.mubr.msk.bf16.vlgmr.msra.gmra.mrb[0].mxu0 %vm350_vm0, %v938_v14 }
  0x1c   : > { %900 = vmatpush3.bf16.msra.mxu1 %v591_v16 }
  0x1d   : > { %554 = vperm.xlu1 %932, %v859_v19  }
  0x1f   : > { %902 = vmatmul.mubr.msk.bf16.vlgmr.msra.gmra.mrb[0].mxu1 %vm582_vm1, %v941_v17  ;;  %v872_v17 = vld [vmem:[%s1194_s6 + $0x28] sm:$0xff] }
  0x87   : > { %v324_v20 = vpop.permute.xlu1 %323  ;;  %v314_v23 = vpop.permute.xlu0 %313 }
  0x8b   : > { %v329_v21 = vpop.permute.xlu1 %328  ;;  %v319_v29 = vpop.permute.xlu0 %318 }
  0x8f   : > { %v540_v22 = vpop.permute.xlu1 %539 }
  0x94   : > { %v545_v24 = vpop.permute.xlu1 %544 }
  0x98   : > { %v550_v31 = vpop.permute.xlu1 %549 }
  0x9c   : > { %v555_v47 = vpop.permute.xlu1 %554 }
  0xed   : > { %v893_v25 = vpop.f32.mrb[0].mxu0 }
  0xee   : > { %v395_v26 = vpop.f32.mrb[1].mxu0  ;;  %v404_v32 = vadd.f32 %v893_v25, %v324_v20 }
  0xef   : > { %v396_v27 = vadd.f32 %v395_v26, %v314_v23  ;;  %v894_v28 = vpop.f32.mrb[2].mxu0 }
  0xf0   : > { %v398_v30 = vpop.f32.mrb[3].mxu0  ;;  %v407_v36 = vadd.f32 %v894_v28, %v329_v21  ;;  %v414_v42 = vsel %vm410_vm4, %v404_v32, 0.0 }
  0xf1   : > { %v399_v33 = vadd.f32 %v398_v30, %v319_v29  ;;  %v411_v35 = vsel %vm410_vm4, %v396_v27, 0.0 }
  0xf2   : > { %v903_v34 = vpop.f32.mrb[0].mxu1  ;;  %v416_v48 = vsel %vm410_vm4, %v407_v36, 0.0 }
  0xf3   : > { %v412_v37 = vsel %vm410_vm4, %v399_v33, 0.0  ;;  %v627_v38 = vpop.f32.mrb[1].mxu1  ;;  %v1059_v44 = vadd.f32 %v903_v34, %v550_v31 }
  0xf4   : > { %v413_v39 = vadd.f32 %v412_v37, %v411_v35  ;;  %v1056_v40 = vadd.f32 %v627_v38, %v540_v22  ;;  %v904_v41 = vpop.f32.mrb[2].mxu1 }
  0xf5   : > { %v630_v43 = vpop.f32.mrb[3].mxu1  ;;  %v1066_v50 = vadd.f32 %v904_v41, %v555_v47  ;;  %v646_v54 = vsel %vm642_vm5, %v1059_v44, 0.0 }
  0xf6   : > { %v1061_v45 = vadd.f32 %v630_v43, %v545_v24  ;;  %v415_v46 = vadd.f32 %v414_v42, %v413_v39  ;;  %v643_v49 = vsel %vm642_vm5, %v1056_v40, 0.0 }
  0xf7   : > { %v648_v56 = vsel %vm642_vm5, %v1066_v50, 0.0 }
  0xf8   : > { %v644_v51 = vsel %vm642_vm5, %v1061_v45, 0.0  ;;  %v417_v52 = vadd.f32 %v416_v48, %v415_v46 }
  0xf9   : > { %v645_v53 = vadd.f32 %v644_v51, %v643_v49 }
  0xfa   : > { %418 = vadd.xlane.f32.xlu0 %v417_v52 }
  0xfb   : > { %v647_v55 = vadd.f32 %v646_v54, %v645_v53 }
  0xfd   : > { %v649_v57 = vadd.f32 %v648_v56, %v647_v55 }
  0xff   : > { %650 = vadd.xlane.f32.xlu0 %v649_v57 }
 0x187   : > { %v419_v58 = vpop.xlane.xlu0 %418 }
 0x188   : > { %v420_v59 = vrot.slane %v419_v58, 4 }
 0x18a   : > { %v421_v60 = vadd.f32 %v420_v59, %v419_v58 }
 0x18c   : > { %v422_v61 = vrot.slane %v421_v60, 2  ;;  %v651_v25 = vpop.xlane.xlu0 %650 }
 0x18d   : > { %v652_v26 = vrot.slane %v651_v25, 4 }
 0x18e   : > { %v423_v62 = vadd.f32 %v422_v61, %v421_v60  ;;  %v867_v60 = vld [vmem:[%s1193_s5 + $0x20] sm:$0xff]  ;;  %v868_v61 = vld [vmem:[%s1193_s5 + $0x28] sm:$0xff] }
 0x190   : > { %v424_v63 = vrot.slane %v423_v62, 1 }
 0x192   : > { %v425_v0 = vadd.f32 %v424_v63, %v423_v62 }
 0x194   : > { %909 = vpush %v425_v0 }
 0x1c5   : > { %s910_s14 = spop %909 }
 0x1c6   : > { %s427_s15 = smul.f32 0.00048828125, %s910_s14 }
 0x1c8   : > { %v428_v1 = vstv %s427_s15 }
 0x1c9   : > { %v1074_v2 = vsub.f32 %v396_v27, %v428_v1  ;;  %v1076_v3 = vsub.f32 %v399_v33, %v428_v1  ;;  %v1078_v4 = vsub.f32 %v404_v32, %v428_v1  ;;  %v1080_v5 = vsub.f32 %v407_v36, %v428_v1  ;;  %v869_v1 = vld [vmem:[%s1193_s5 + $0x30] sm:$0xff] }
 0x1ca   : > { %v653_v27 = vadd.f32 %v652_v26, %v651_v25 }
 0x1cb   : > { %v433_v6 = vmul.f32 %v1074_v2, %v1074_v2  ;;  %v434_v7 = vmul.f32 %v1076_v3, %v1076_v3  ;;  %v435_v8 = vmul.f32 %v1078_v4, %v1078_v4  ;;  %v436_v9 = vmul.f32 %v1080_v5, %v1080_v5 }
 0x1cc   : > { %v654_v28 = vrot.slane %v653_v27, 2 }
 0x1cd   : > { %v437_v10 = vsel %vm410_vm4, %v433_v6, 0.0  ;;  %v438_v11 = vsel %vm410_vm4, %v434_v7, 0.0  ;;  %v440_v13 = vsel %vm410_vm4, %v435_v8, 0.0  ;;  %v442_v15 = vsel %vm410_vm4, %v436_v9, 0.0  ;;  %v874_v6 = vld [vmem:[%s1194_s6 + $0x38] sm:$0xff] }
 0x1ce   : > { %v439_v12 = vadd.f32 %v438_v11, %v437_v10  ;;  %v655_v30 = vadd.f32 %v654_v28, %v653_v27  ;;  %v870_v9 = vld [vmem:[%s1193_s5 + $0x38] sm:$0xff]  ;;  %v455_v10 = vld [vmem:[%s1193_s5 + $0x8] sm:$0xff] }
 0x1d0   : > { %v441_v14 = vadd.f32 %v440_v13, %v439_v12  ;;  %v656_v31 = vrot.slane %v655_v30, 1  ;;  %v457_v13 = vld [vmem:[%s1193_s5 + $0x18] sm:$0xff] }
 0x1d2   : > { %v443_v16 = vadd.f32 %v442_v15, %v441_v14  ;;  %v657_v33 = vadd.f32 %v656_v31, %v655_v30  ;;  %v873_v14 = vld [vmem:[%s1194_s6 + $0x30] sm:$0xff] }
 0x1d4   : > { %444 = vadd.xlane.f32.xlu1 %v443_v16  ;;  %v454_v16 = vld [vmem:[%s1193_s5] sm:$0xff] }
 0x1e5   : > { %736 = vperm.xlu1 %932, %v872_v17   ;;  %v492_v17 = vld [vmem:[%s1194_s6 + $0x8] sm:$0xff] }
 0x261   : > { %v445_v18 = vpop.xlane.xlu1 %444 }
 0x262   : > { %v446_v19 = vrot.slane %v445_v18, 4 }
 0x264   : > { %v447_v20 = vadd.f32 %v446_v19, %v445_v18  ;;  %v456_v19 = vld [vmem:[%s1193_s5 + $0x10] sm:$0xff] }
 0x266   : > { %v448_v21 = vrot.slane %v447_v20, 2 }
 0x268   : > { %v449_v22 = vadd.f32 %v448_v21, %v447_v20  ;;  %v494_v20 = vld [vmem:[%s1194_s6 + $0x18] sm:$0xff] }
 0x26a   : > { %v450_v23 = vrot.slane %v449_v22, 1 }
 0x26c   : > { %v451_v24 = vadd.f32 %v450_v23, %v449_v22  ;;  %v491_v22 = vld [vmem:[%s1194_s6] sm:$0xff]  ;;  %v493_v23 = vld [vmem:[%s1194_s6 + $0x10] sm:$0xff] }
 0x26e   : > { %911 = vpush %v451_v24  ;;  %v737_v24 = vpop.permute.xlu1 %736 }
 0x29f   : > { %s912_s18 = spop %911 }
 0x2a0   : > { %s453_s19 = smul.f32 0.00048828125, %s912_s18 }
 0x2a2   : > { %s458_s20 = sadd.f32 1e-05, %s453_s19 }
 0x2a4   : > { %v459_v29 = vstv %s458_s20  ;;  %s298_s20 = scalar_lea.vmem %s1195_s7, %s877_s17 }
 0x2a5   : > { %942 = vrsqrt.f32 %v459_v29 }
 0x2af   : > { %v943_v32 = vpop.eup %942 }
 0x2b0   : > { %913 = vpush %v943_v32 }
 0x2b1   : > { %915 = vpush %v657_v33 }
 0x2e1   : > { %s1097_s21 = spop %913 }
 0x2e2   : > { %s916_s22 = spop %915  ;;  %v462_v8 = vstv %s1097_s21 }
 0x2e3   : > { %s659_s23 = smul.f32 0.0009765625, %s916_s22  ;;  %v464_v12 = vmul.f32 %v462_v8, %v455_v10  ;;  %v466_v15 = vmul.f32 %v462_v8, %v457_v13  ;;  %v463_v18 = vmul.f32 %v462_v8, %v454_v16  ;;  %v465_v21 = vmul.f32 %v462_v8, %v456_v19 }
 0x2e5   : > { %v660_v34 = vstv %s659_s23 }
 0x2e6   : > { %v1100_v35 = vsub.f32 %v1056_v40, %v660_v34  ;;  %v1103_v36 = vsub.f32 %v1061_v45, %v660_v34  ;;  %v1106_v37 = vsub.f32 %v1059_v44, %v660_v34  ;;  %v1109_v38 = vsub.f32 %v1066_v50, %v660_v34  ;;  %v871_v50 = vld [vmem:[%s1194_s6 + $0x20] sm:$0xff] }
 0x2e8   : > { %v665_v39 = vmul.f32 %v1100_v35, %v1100_v35  ;;  %v666_v41 = vmul.f32 %v1103_v36, %v1103_v36  ;;  %v667_v42 = vmul.f32 %v1106_v37, %v1106_v37  ;;  %v668_v40 = vmul.f32 %v1109_v38, %v1109_v38 }
 0x2ea   : > { %v669_v43 = vsel %vm642_vm5, %v665_v39, 0.0  ;;  %v670_v44 = vsel %vm642_vm5, %v666_v41, 0.0  ;;  %v672_v46 = vsel %vm642_vm5, %v667_v42, 0.0  ;;  %v674_v48 = vsel %vm642_vm5, %v668_v40, 0.0 }
 0x2eb   : > { %v671_v45 = vadd.f32 %v670_v44, %v669_v43 }
 0x2ed   : > { %v673_v47 = vadd.f32 %v672_v46, %v671_v45 }
 0x2ef   : > { %v675_v49 = vadd.f32 %v674_v48, %v673_v47 }
 0x2f1   : > { %676 = vadd.xlane.f32.xlu0 %v675_v49 }
 0x307   : > { %731 = vperm.xlu0 %931, %v871_v50  }
 0x37e   : > { %v677_v51 = vpop.xlane.xlu0 %676 }
 0x37f   : > { %v678_v52 = vrot.slane %v677_v51, 4 }
 0x381   : > { %v679_v53 = vadd.f32 %v678_v52, %v677_v51 }
 0x383   : > { %v680_v54 = vrot.slane %v679_v53, 2 }
 0x385   : > { %v681_v55 = vadd.f32 %v680_v54, %v679_v53 }
 0x386   : > { %v732_v25 = vpop.permute.xlu0 %731 }
 0x387   : > { %v682_v56 = vrot.slane %v681_v55, 1 }
 0x389   : > { %v683_v57 = vadd.f32 %v682_v56, %v681_v55 }
 0x38b   : > { %917 = vpush %v683_v57 }
 0x3bc   : > { %s918_s28 = spop %917 }
 0x3bd   : > { %s685_s29 = smul.f32 0.0009765625, %s918_s28 }
 0x3bf   : > { %s691_s30 = sadd.f32 1e-05, %s685_s29 }
 0x3c1   : > { %v692_v58 = vstv %s691_s30 }
 0x3c2   : > { %944 = vrsqrt.f32 %v692_v58 }
 0x3cc   : > { %v945_v59 = vpop.eup %944 }
 0x3cd   : > { %919 = vpush %v945_v59 }
 0x3fe   : > { %s920_s12 = spop %919 }
 0x3ff   : > { %v695_v62 = vstv %s920_s12 }
 0x400   : > { %v696_v63 = vmul.f32 %v867_v60, %v695_v62  ;;  %v697_v0 = vmul.f32 %v868_v61, %v695_v62  ;;  %v698_v7 = vmul.f32 %v869_v1, %v695_v62  ;;  %v699_v11 = vmul.f32 %v870_v9, %v695_v62 }
 0x402   : > { %707 = vperm.xlu1 %932, %v697_v0   ;;  %702 = vperm.xlu0 %931, %v696_v63  }
 0x406   : > { %746 = vperm.xlu1 %932, %v874_v6   ;;  %712 = vperm.xlu0 %931, %v698_v7  }
 0x40a   : > { %474 = vperm.xlu1 %932, %v464_v12   ;;  %717 = vperm.xlu0 %931, %v699_v11  }
 0x40e   : > { %484 = vperm.xlu1 %932, %v466_v15   ;;  %741 = vperm.xlu0 %931, %v873_v14  }
 0x412   : > { %502 = vperm.xlu1 %932, %v492_v17   ;;  %469 = vperm.xlu0 %931, %v463_v18  }
 0x416   : > { %512 = vperm.xlu1 %932, %v494_v20   ;;  %479 = vperm.xlu0 %931, %v465_v21  }
 0x41a   : > { %497 = vperm.xlu0 %931, %v491_v22  }
 0x41e   : > { %507 = vperm.xlu0 %931, %v493_v23  }
 0x481   : > { %v708_v26 = vpop.permute.xlu1 %707  ;;  %v703_v27 = vpop.permute.xlu0 %702 }
 0x482   : > { %v721_v28 = vmul.f32 %v708_v26, %v1103_v36  ;;  %v720_v29 = vmul.f32 %v703_v27, %v1100_v35 }
 0x484   : > { %v750_v30 = vadd.f32 %v737_v24, %v721_v28  ;;  %v749_v31 = vadd.f32 %v732_v25, %v720_v29 }
 0x485   : > { %v747_v32 = vpop.permute.xlu1 %746  ;;  %v713_v33 = vpop.permute.xlu0 %712 }
 0x486   : > { %759 = vrot.lane.b32.xlu1 %v750_v30, %s955_s16  ;;  %757 = vrot.lane.b32.xlu0 %v749_v31, %s955_s16  ;;  %v722_v42 = vmul.f32 %v713_v33, %v1106_v37 }
 0x489   : > { %v475_v34 = vpop.permute.xlu1 %474  ;;  %v718_v39 = vpop.permute.xlu0 %717 }
 0x48a   : > { %v723_v41 = vmul.f32 %v718_v39, %v1109_v38  ;;  %v488_v35 = vmul.f32 %v475_v34, %v1076_v3 }
 0x48c   : > { %v752_v40 = vadd.f32 %v747_v32, %v723_v41 }
 0x48d   : > { %v485_v43 = vpop.permute.xlu1 %484  ;;  %v742_v44 = vpop.permute.xlu0 %741 }
 0x48e   : > { %v751_v36 = vadd.f32 %v742_v44, %v722_v42  ;;  %763 = vrot.lane.b32.xlu1 %v752_v40, %s955_s16  ;;  %v490_v38 = vmul.f32 %v485_v43, %v1080_v5 }
 0x490   : > { %761 = vrot.lane.b32.xlu0 %v751_v36, %s955_s16 }
 0x491   : > { %v503_v45 = vpop.permute.xlu1 %502  ;;  %v470_v46 = vpop.permute.xlu0 %469 }
 0x492   : > { %v516_v47 = vadd.f32 %v503_v45, %v488_v35  ;;  %v487_v50 = vmul.f32 %v470_v46, %v1074_v2 }
 0x494   : > { %520 = vst.msk [vmem:[%s298_s20 + $0x8] sm:$0xff] %vm410_vm4, %v516_v47 }
 0x495   : > { %v513_v37 = vpop.permute.xlu1 %512  ;;  %v480_v48 = vpop.permute.xlu0 %479 }
 0x496   : > { %v518_v49 = vadd.f32 %v513_v37, %v490_v38  ;;  %v489_v52 = vmul.f32 %v480_v48, %v1078_v4 }
 0x498   : > { %522 = vst.msk [vmem:[%s298_s20 + $0x18] sm:$0xff] %vm410_vm4, %v518_v49 }
 0x499   : > { %v498_v3 = vpop.permute.xlu0 %497 }
 0x49a   : > { %v515_v51 = vadd.f32 %v498_v3, %v487_v50 }
 0x49c   : > { %519 = vst.msk [vmem:[%s298_s20] sm:$0xff] %vm410_vm4, %v515_v51 }
 0x49d   : > { %v508_v53 = vpop.permute.xlu0 %507 }
 0x49e   : > { %v517_v54 = vadd.f32 %v508_v53, %v489_v52 }
 0x4a0   : > { %521 = vst.msk [vmem:[%s298_s20 + $0x10] sm:$0xff] %vm410_vm4, %v517_v54 }
 0x4f8   : > { %v760_v5 = vpop.permute.xlu1 %759  ;;  %v758_v55 = vpop.permute.xlu0 %757 }
 0x4f9   : > { %771 = vst.msk [vmem:[%s298_s20 + $0x8] sm:$0xff] %vm769_vm6, %v760_v5  ;;  %770 = vst.msk [vmem:[%s298_s20] sm:$0xff] %vm769_vm6, %v758_v55 }
 0x500   : > { %v764_v56 = vpop.permute.xlu1 %763 }
 0x501   : > { %773 = vst.msk [vmem:[%s298_s20 + $0x18] sm:$0xff] %vm769_vm6, %v764_v56 }
 0x502   : > { %v762_v2 = vpop.permute.xlu0 %761 }
 0x503   : > { %772 = vst.msk [vmem:[%s298_s20 + $0x10] sm:$0xff] %vm769_vm6, %v762_v2 }
 0x504 PF: > { %s17_s24 = sadd.s32 1, %s952_s24  }
 0x505   : > { %p14_p4 = scmp.ge.s32.totalorder %s17_s24, 4  }
 0x507   :  { %16 = sbr.rel (!%p14_p4) target bundleno = 1 (0x1), region = 84 }

</bundles_post_ra>
